<compile_context>
chip_gen: v7x
topology: tpu7x:2x2x1
jax: 0.10.0
libtpu: 0.0.40
codegen_flags: <defaults>
</compile_context>

<pallas_src>
import functools

import jax
import jax.numpy as jnp
from jax import lax
from jax.experimental import pallas as pl
from jax.experimental.pallas import tpu as pltpu


# ----------------------------------------------------------------------------
# Kernel: whole-image YOLO loss, vectorized over (objects, boxes, cells).
# ----------------------------------------------------------------------------
def _yolo_loss_kernel(objn_ref, lab_ref, p_p_ref, p_c_ref, p_box_ref, out_ref, *,
                      s, num_classes, boxes, m, omax, cell, img,
                      class_scale, object_scale, noobject_scale, coord_scale):
    i = pl.program_id(0)
    n_obj = objn_ref[i]                       # valid-object count (SMEM scalar)
    n_obj_f = n_obj.astype(jnp.float32)

    s_f = float(s)
    inv_cell2 = 1.0 / (cell * cell)
    inv_img = 1.0 / img

    # ---- per-object label features, objects on sublanes: (1, Omax, 1) ----
    lx = lab_ref[0][None]
    ly = lab_ref[1][None]
    lw = lab_ref[2][None]
    lh = lab_ref[3][None]
    lcls = lab_ref[4][None].astype(jnp.int32)

    lx1 = lx - 0.5 * lw
    lx2 = lx + 0.5 * lw
    ly1 = ly - 0.5 * lh
    ly2 = ly + 0.5 * lh
    area2 = lw * lh
    sqrt_w = jnp.sqrt(jnp.abs(lw))
    sqrt_h = jnp.sqrt(jnp.abs(lh))
    xmin = jnp.floor(lx1 / cell)
    xmax = jnp.minimum(jnp.ceil(lx2 / cell), s_f)
    ymin = jnp.floor(ly1 / cell)
    ymax = jnp.minimum(jnp.ceil(ly2 / cell), s_f)
    cxc = jnp.floor(lx / cell)
    cyc = jnp.floor(ly / cell)

    # Padded object slots contribute nothing (folded into the masks below).
    obj_idx = lax.broadcasted_iota(jnp.int32, (1, omax, 1), 1)
    valid = jnp.where(obj_idx < n_obj, 1.0, 0.0)          # (1, Omax, 1)

    # ---- cell indices on lanes: (1, 1, M); flat index = y * S + x ----
    m_f = lax.broadcasted_iota(jnp.int32, (1, 1, m), 2).astype(jnp.float32)
    yc = jnp.floor(m_f / s_f)
    xc = m_f - yc * s_f

    # ---- per-(object, cell) masks: (1, Omax, M) ----
    # Assumes label boxes lie inside the image (same assumption as before;
    # the reference's Python slicing would wrap for negative indices).
    obj_mask = jnp.where((xc >= xmin) & (xc < xmax)
                         & (yc >= ymin) & (yc < ymax), 1.0, 0.0) * valid
    center_mask = jnp.where((xc == cxc) & (yc == cyc), 1.0, 0.0) * valid

    # ---- object-invariant prediction decode, once per image: (B, 1, M) ----
    raw = p_box_ref[...]                      # (4*B, 1, M), coord-major rows
    b_ = boxes
    p_x = raw[0 * b_:1 * b_] * cell + cell * xc
    p_y = raw[1 * b_:2 * b_] * cell + cell * yc
    p_w = raw[2 * b_:3 * b_] * img
    p_h = raw[3 * b_:4 * b_] * img
    px1 = p_x - 0.5 * p_w
    px2 = p_x + 0.5 * p_w
    py1 = p_y - 0.5 * p_h
    py2 = p_y + 0.5 * p_h
    area1 = p_w * p_h
    p_sqrt_w = jnp.sqrt(jnp.clip(p_w, 0.0, img))
    p_sqrt_h = jnp.sqrt(jnp.clip(p_h, 0.0, img))
    p_c = p_c_ref[...]                        # (B, 1, M) box confidences
    pc2 = p_c * p_c
    sum_pc2 = jnp.sum(pc2)

    # ---- IoU of every predicted box against every label box: (B, Omax, M) --
    iw = jnp.maximum(jnp.minimum(px2, lx2) - jnp.maximum(px1, lx1), 0.0)
    ih = jnp.maximum(jnp.minimum(py2, ly2) - jnp.maximum(py1, ly1), 0.0)
    inter = iw * ih
    iou = inter * pl.reciprocal(area1 + area2 - inter + 1e-6, approx=True)

    iou_max = jnp.max(iou, axis=0, keepdims=True)         # max over boxes
    c_t = iou * center_mask
    i_mask = jnp.where(iou >= iou_max, 1.0, 0.0) * center_mask

    # ---- class loss: (C, Omax, M) ----
    p_p = p_p_ref[...]                        # (C, 1, M) class scores
    cls_iota = lax.broadcasted_iota(jnp.int32, (num_classes, 1, 1), 0)
    one_hot = jnp.where(cls_iota == lcls, 1.0, 0.0)        # (C, Omax, 1)
    class_err = obj_mask * (p_p - one_hot)
    class_loss = (0.5 * class_scale) * jnp.sum(class_err * class_err)

    # ---- object loss ----
    obj_err = i_mask * (p_c - c_t)
    object_loss = (0.5 * object_scale) * jnp.sum(obj_err * obj_err)

    # ---- no-object loss ----
    # i_mask is binary, so per valid object: sum(((1-I)*p_c)^2)
    #   = sum(p_c^2) - sum(I*p_c^2); summed over the n_obj valid objects.
    noobject_loss = (0.5 * noobject_scale) * (
        n_obj_f * sum_pc2 - jnp.sum(i_mask * pc2))

    # ---- coordinate loss ----
    dx = i_mask * (p_x - lx)
    dy = i_mask * (p_y - ly)
    dw = i_mask * (p_sqrt_w - sqrt_w)
    dh = i_mask * (p_sqrt_h - sqrt_h)
    coord_loss = coord_scale * (
        (0.5 * inv_cell2) * (jnp.sum(dx * dx) + jnp.sum(dy * dy))
        + (0.5 * inv_img) * (jnp.sum(dw * dw) + jnp.sum(dh * dh)))

    total = class_loss + object_loss + noobject_loss + coord_loss
    out_ref[...] = jnp.zeros_like(out_ref) + total


# ----------------------------------------------------------------------------
# Wrapper: lane-dense layout plumbing, then one pallas_call over grid=(batch,).
# ----------------------------------------------------------------------------
@functools.partial(
    jax.jit,
    static_argnames=("cell_size", "num_classes", "boxes_per_cell", "image_size",
                     "class_scale", "object_scale", "noobject_scale",
                     "coord_scale"))
def yolo_loss(predicts, labels, objects_num, *, cell_size, num_classes,
              boxes_per_cell, image_size, class_scale, object_scale,
              noobject_scale, coord_scale):
    n, s, _, d = predicts.shape
    b = boxes_per_cell
    c = num_classes
    m = s * s
    omax = labels.shape[1]
    img = float(image_size)
    cell = img / float(cell_size)

    pred = predicts.astype(jnp.float32).reshape(n, m, d)
    # Lane-dense prediction slabs: the S*S cell axis is the last (lane) dim.
    p_p = jnp.transpose(pred[:, :, :c], (0, 2, 1))[:, :, None, :]        # (N,C,1,M)
    p_c = jnp.transpose(pred[:, :, c:c + b], (0, 2, 1))[:, :, None, :]   # (N,B,1,M)
    p_box = jnp.transpose(pred[:, :, c + b:].reshape(n, m, b, 4),
                          (0, 3, 2, 1)).reshape(n, 4 * b, m)[:, :, None, :]  # (N,4B,1,M)
    # Raw labels with objects on the sublane axis: (N, 5, Omax, 1).
    lab = jnp.transpose(labels.astype(jnp.float32), (0, 2, 1))[..., None]
    objn = objects_num.astype(jnp.int32)

    kernel = functools.partial(
        _yolo_loss_kernel,
        s=s, num_classes=c, boxes=b, m=m, omax=omax, cell=cell, img=img,
        class_scale=float(class_scale), object_scale=float(object_scale),
        noobject_scale=float(noobject_scale), coord_scale=float(coord_scale))

    per_image = pl.pallas_call(
        kernel,
        out_shape=jax.ShapeDtypeStruct((n, 1, 1), jnp.float32),
        grid_spec=pltpu.PrefetchScalarGridSpec(
            num_scalar_prefetch=0,
            grid=(n,),
            in_specs=[
                pl.BlockSpec(memory_space=pltpu.MemorySpace.SMEM),           # objn
                pl.BlockSpec((None, 5, omax, 1), lambda i: (i, 0, 0, 0)),    # labels
                pl.BlockSpec((None, c, 1, m), lambda i: (i, 0, 0, 0)),       # p_p
                pl.BlockSpec((None, b, 1, m), lambda i: (i, 0, 0, 0)),       # p_c
                pl.BlockSpec((None, 4 * b, 1, m), lambda i: (i, 0, 0, 0)),   # p_box
            ],
            out_specs=pl.BlockSpec((1, 1, 1), lambda i: (i, 0, 0)),
        ),
        compiler_params=pltpu.CompilerParams(
            dimension_semantics=("parallel",)),
    )(objn, lab, p_p, p_c, p_box)

    # TODO(synk): no kernel equivalent of the batch_size == 0 debug print.
    return jnp.sum(per_image) / n


# ----------------------------------------------------------------------------
# Plain-JAX port of the PyTorch module, used only for verification in main.
# ----------------------------------------------------------------------------
def yolo_loss_reference(predicts, labels, objects_num, *, cell_size, num_classes,
                        boxes_per_cell, image_size, class_scale, object_scale,
                        noobject_scale, coord_scale):
    s, bb, cc = cell_size, boxes_per_cell, num_classes
    img = float(image_size)
    cell = img / s

    gy, gx = jnp.meshgrid(jnp.arange(s, dtype=jnp.float32),
                          jnp.arange(s, dtype=jnp.float32), indexing="ij")
    zeros = jnp.zeros_like(gx)
    base = jnp.stack([gx * cell, gy * cell, zeros, zeros], axis=-1)[:, :, None, :]
    base = jnp.broadcast_to(base, (s, s, bb, 4))
    mult = jnp.array([cell, cell, img, img], jnp.float32)

    def l2(v):
        return 0.5 * jnp.sum(v * v)

    total = jnp.float32(0.0)
    n = predicts.shape[0]
    for i in range(n):
        pred = predicts[i].astype(jnp.float32)
        for j in range(int(objects_num[i])):
            label = labels[i, j].astype(jnp.float32)
            min_x = jnp.floor((label[0] - label[2] / 2) / cell)
            max_x = jnp.minimum(jnp.ceil((label[0] + label[2] / 2) / cell), s)
            min_y = jnp.floor((label[1] - label[3] / 2) / cell)
            max_y = jnp.minimum(jnp.ceil((label[1] + label[3] / 2) / cell), s)
            object_mask = jnp.zeros((s, s), jnp.float32)
            object_mask = object_mask.at[int(min_y):int(max_y),
                                         int(min_x):int(max_x)].set(1.0)
            center_mask = jnp.zeros((s, s), jnp.float32)
            center_mask = center_mask.at[int(label[1] // cell),
                                         int(label[0] // cell)].set(1.0)

            pb = pred[:, :, cc + bb:].reshape(s, s, bb, 4) * mult + base
            b1 = jnp.stack([pb[..., 0] - pb[..., 2] / 2, pb[..., 1] - pb[..., 3] / 2,
                            pb[..., 0] + pb[..., 2] / 2, pb[..., 1] + pb[..., 3] / 2],
                           axis=-1)
            b2 = jnp.stack([label[0] - label[2] / 2, label[1] - label[3] / 2,
                            label[0] + label[2] / 2, label[1] + label[3] / 2])
            lu = jnp.maximum(b1[..., :2], b2[:2])
            rd = jnp.minimum(b1[..., 2:], b2[2:])
            inter = jnp.clip(rd - lu, 0.0, None)
            inter_area = inter[..., 0] * inter[..., 1]
            sq1 = (b1[..., 2] - b1[..., 0]) * (b1[..., 3] - b1[..., 1])
            sq2 = (b2[2] - b2[0]) * (b2[3] - b2[1])
            iou = inter_area / (sq1 + sq2 - inter_area + 1e-6)

            c_t = iou * center_mask[..., None]
            i_mask = (iou >= iou.max(axis=-1, keepdims=True)).astype(jnp.float32)
            i_mask = i_mask * center_mask[..., None]
            no_i = 1.0 - i_mask
            p_c = pred[:, :, cc:cc + bb]
            sqw = jnp.sqrt(jnp.abs(label[2]))
            sqh = jnp.sqrt(jnp.abs(label[3]))
            p_x = pb[..., 0]
            p_y = pb[..., 1]
            psw = jnp.sqrt(jnp.clip(pb[..., 2], 0.0, img))
            psh = jnp.sqrt(jnp.clip(pb[..., 3], 0.0, img))
            one_hot = jax.nn.one_hot(label[4].astype(jnp.int32), cc,
                                     dtype=jnp.float32)
            p_p = pred[:, :, :cc]

            class_loss = l2(object_mask[..., None] * (p_p - one_hot)) * class_scale
            object_loss = l2(i_mask * (p_c - c_t)) * object_scale
            noobject_loss = l2(no_i * p_c) * noobject_scale
            coord_loss = (l2(i_mask * (p_x - label[0]) / cell)
                          + l2(i_mask * (p_y - label[1]) / cell)
                          + l2(i_mask * (psw - sqw)) / img
                          + l2(i_mask * (psh - sqh)) / img) * coord_scale
            total = total + class_loss + object_loss + noobject_loss + coord_loss
    return total / n


if __name__ == "__main__":
    key = jax.random.PRNGKey(0)
    k_pred, k_center, k_size, k_cls = jax.random.split(key, 4)

    cell_size = 4
    num_classes = 4
    boxes_per_cell = 2
    image_size = 32.0
    class_scale = 2.0
    object_scale = 1.0
    noobject_scale = 0.5
    coord_scale = 5.0

    batch, max_objects = 2, 3
    depth = num_classes + 5 * boxes_per_cell          # 14

    predicts = jax.random.normal(
        k_pred, (batch, cell_size, cell_size, depth), dtype=jnp.float32)
    centers = jax.random.uniform(k_center, (batch, max_objects, 2),
                                 minval=8.0, maxval=24.0, dtype=jnp.float32)
    sizes = jax.random.uniform(k_size, (batch, max_objects, 2),
                               minval=4.0, maxval=14.0, dtype=jnp.float32)
    classes = jax.random.randint(
        k_cls, (batch, max_objects, 1), 0, num_classes).astype(jnp.float32)
    labels = jnp.concatenate([centers, sizes, classes], axis=-1)   # (B, O, 5)
    objects_num = jnp.array([2, 3], dtype=jnp.int32)

    loss = yolo_loss(predicts, labels, objects_num,
                     cell_size=cell_size, num_classes=num_classes,
                     boxes_per_cell=boxes_per_cell, image_size=image_size,
                     class_scale=class_scale, object_scale=object_scale,
                     noobject_scale=noobject_scale, coord_scale=coord_scale)
    loss = jax.block_until_ready(loss)

    ref = yolo_loss_reference(predicts, labels, objects_num,
                              cell_size=cell_size, num_classes=num_classes,
                              boxes_per_cell=boxes_per_cell,
                              image_size=image_size,
                              class_scale=class_scale,
                              object_scale=object_scale,
                              noobject_scale=noobject_scale,
                              coord_scale=coord_scale)
    ref = jax.block_until_ready(ref)

    out_v = float(loss)
    ref_v = float(ref)
    assert abs(out_v - ref_v) <= 1e-3 * max(1.0, abs(ref_v)), (out_v, ref_v)
    print("KERNEL_OK")
</pallas_src>

<mosaic_0001>
module attributes {stable_mosaic.version = 11 : i64} {
  func.func @_yolo_loss_kernel(%arg0: i32, %arg1: memref<2xi32, #tpu.memory_space<smem>>, %arg2: memref<1x5x3x1xf32, #tpu.memory_space<vmem>>, %arg3: memref<1x4x1x16xf32, #tpu.memory_space<vmem>>, %arg4: memref<1x2x1x16xf32, #tpu.memory_space<vmem>>, %arg5: memref<1x8x1x16xf32, #tpu.memory_space<vmem>>, %arg6: memref<1x1x1xf32, #tpu.memory_space<vmem>>) attributes {dimension_semantics = [#tpu.dimension_semantics<parallel>], iteration_bounds = array<i64: 2>, scalar_prefetch = 0 : i64, scratch_operands = 0 : i64, tpu.core_type = #tpu.core_type<tc>, window_params = [{transform_indices = @transform_0, window_bounds = array<i64: 2>}, {transform_indices = @transform_1, window_bounds = array<i64: 1, 5, 3, 1>}, {transform_indices = @transform_2, window_bounds = array<i64: 1, 4, 1, 16>}, {transform_indices = @transform_3, window_bounds = array<i64: 1, 2, 1, 16>}, {transform_indices = @transform_4, window_bounds = array<i64: 1, 8, 1, 16>}, {transform_indices = @transform_5, window_bounds = array<i64: 1, 1, 1>}]} {
    %0 = arith.index_cast %arg0 : i32 to index
    %1 = memref.load %arg1[%0] : memref<2xi32, #tpu.memory_space<smem>>
    %2 = arith.sitofp %1 : i32 to f32
    %c0 = arith.constant 0 : index
    %c0_0 = arith.constant 0 : index
    %c0_1 = arith.constant 0 : index
    %c0_2 = arith.constant 0 : index
    %3 = vector.load %arg2[%c0, %c0_0, %c0_1, %c0_2] : memref<1x5x3x1xf32, #tpu.memory_space<vmem>>, vector<1x1x3x1xf32>
    %4 = vector.shape_cast %3 : vector<1x1x3x1xf32> to vector<3x1xf32>
    %5 = vector.shape_cast %4 : vector<3x1xf32> to vector<1x3x1xf32>
    %c0_3 = arith.constant 0 : index
    %c1 = arith.constant 1 : index
    %c0_4 = arith.constant 0 : index
    %c0_5 = arith.constant 0 : index
    %6 = vector.load %arg2[%c0_3, %c1, %c0_4, %c0_5] : memref<1x5x3x1xf32, #tpu.memory_space<vmem>>, vector<1x1x3x1xf32>
    %7 = vector.shape_cast %6 : vector<1x1x3x1xf32> to vector<3x1xf32>
    %8 = vector.shape_cast %7 : vector<3x1xf32> to vector<1x3x1xf32>
    %c0_6 = arith.constant 0 : index
    %c2 = arith.constant 2 : index
    %c0_7 = arith.constant 0 : index
    %c0_8 = arith.constant 0 : index
    %9 = vector.load %arg2[%c0_6, %c2, %c0_7, %c0_8] : memref<1x5x3x1xf32, #tpu.memory_space<vmem>>, vector<1x1x3x1xf32>
    %10 = vector.shape_cast %9 : vector<1x1x3x1xf32> to vector<3x1xf32>
    %11 = vector.shape_cast %10 : vector<3x1xf32> to vector<1x3x1xf32>
    %c0_9 = arith.constant 0 : index
    %c3 = arith.constant 3 : index
    %c0_10 = arith.constant 0 : index
    %c0_11 = arith.constant 0 : index
    %12 = vector.load %arg2[%c0_9, %c3, %c0_10, %c0_11] : memref<1x5x3x1xf32, #tpu.memory_space<vmem>>, vector<1x1x3x1xf32>
    %13 = vector.shape_cast %12 : vector<1x1x3x1xf32> to vector<3x1xf32>
    %14 = vector.shape_cast %13 : vector<3x1xf32> to vector<1x3x1xf32>
    %c0_12 = arith.constant 0 : index
    %c4 = arith.constant 4 : index
    %c0_13 = arith.constant 0 : index
    %c0_14 = arith.constant 0 : index
    %15 = vector.load %arg2[%c0_12, %c4, %c0_13, %c0_14] : memref<1x5x3x1xf32, #tpu.memory_space<vmem>>, vector<1x1x3x1xf32>
    %16 = vector.shape_cast %15 : vector<1x1x3x1xf32> to vector<3x1xf32>
    %17 = vector.shape_cast %16 : vector<3x1xf32> to vector<1x3x1xf32>
    %18 = arith.fptosi %17 : vector<1x3x1xf32> to vector<1x3x1xi32>
    %cst = arith.constant 5.000000e-01 : f32
    %19 = vector.broadcast %cst : f32 to vector<1x3x1xf32>
    %20 = arith.mulf %19, %11 : vector<1x3x1xf32>
    %21 = arith.subf %5, %20 : vector<1x3x1xf32>
    %cst_15 = arith.constant 5.000000e-01 : f32
    %22 = vector.broadcast %cst_15 : f32 to vector<1x3x1xf32>
    %23 = arith.mulf %22, %11 : vector<1x3x1xf32>
    %24 = arith.addf %5, %23 : vector<1x3x1xf32>
    %cst_16 = arith.constant 5.000000e-01 : f32
    %25 = vector.broadcast %cst_16 : f32 to vector<1x3x1xf32>
    %26 = arith.mulf %25, %14 : vector<1x3x1xf32>
    %27 = arith.subf %8, %26 : vector<1x3x1xf32>
    %cst_17 = arith.constant 5.000000e-01 : f32
    %28 = vector.broadcast %cst_17 : f32 to vector<1x3x1xf32>
    %29 = arith.mulf %28, %14 : vector<1x3x1xf32>
    %30 = arith.addf %8, %29 : vector<1x3x1xf32>
    %31 = arith.mulf %11, %14 : vector<1x3x1xf32>
    %32 = math.absf %11 : vector<1x3x1xf32>
    %33 = math.sqrt %32 : vector<1x3x1xf32>
    %34 = math.absf %14 : vector<1x3x1xf32>
    %35 = math.sqrt %34 : vector<1x3x1xf32>
    %cst_18 = arith.constant 8.000000e+00 : f32
    %36 = vector.broadcast %cst_18 : f32 to vector<1x3x1xf32>
    %37 = arith.divf %21, %36 : vector<1x3x1xf32>
    %38 = math.floor %37 : vector<1x3x1xf32>
    %cst_19 = arith.constant 8.000000e+00 : f32
    %39 = vector.broadcast %cst_19 : f32 to vector<1x3x1xf32>
    %40 = arith.divf %24, %39 : vector<1x3x1xf32>
    %41 = math.ceil %40 : vector<1x3x1xf32>
    %cst_20 = arith.constant 4.000000e+00 : f32
    %42 = vector.broadcast %cst_20 : f32 to vector<1x3x1xf32>
    %43 = arith.minimumf %41, %42 : vector<1x3x1xf32>
    %cst_21 = arith.constant 8.000000e+00 : f32
    %44 = vector.broadcast %cst_21 : f32 to vector<1x3x1xf32>
    %45 = arith.divf %27, %44 : vector<1x3x1xf32>
    %46 = math.floor %45 : vector<1x3x1xf32>
    %cst_22 = arith.constant 8.000000e+00 : f32
    %47 = vector.broadcast %cst_22 : f32 to vector<1x3x1xf32>
    %48 = arith.divf %30, %47 : vector<1x3x1xf32>
    %49 = math.ceil %48 : vector<1x3x1xf32>
    %cst_23 = arith.constant 4.000000e+00 : f32
    %50 = vector.broadcast %cst_23 : f32 to vector<1x3x1xf32>
    %51 = arith.minimumf %49, %50 : vector<1x3x1xf32>
    %cst_24 = arith.constant 8.000000e+00 : f32
    %52 = vector.broadcast %cst_24 : f32 to vector<1x3x1xf32>
    %53 = arith.divf %5, %52 : vector<1x3x1xf32>
    %54 = math.floor %53 : vector<1x3x1xf32>
    %cst_25 = arith.constant 8.000000e+00 : f32
    %55 = vector.broadcast %cst_25 : f32 to vector<1x3x1xf32>
    %56 = arith.divf %8, %55 : vector<1x3x1xf32>
    %57 = math.floor %56 : vector<1x3x1xf32>
    %58 = tpu.iota {dimensions = array<i32: 1>} : vector<1x3x1xi32>
    %59 = vector.broadcast %1 : i32 to vector<1x3x1xi32>
    %60 = arith.cmpi slt, %58, %59 : vector<1x3x1xi32>
    %cst_26 = arith.constant 1.000000e+00 : f32
    %cst_27 = arith.constant 0.000000e+00 : f32
    %61 = vector.broadcast %cst_26 : f32 to vector<1x3x1xf32>
    %62 = vector.broadcast %cst_27 : f32 to vector<1x3x1xf32>
    %63 = arith.select %60, %61, %62 : vector<1x3x1xi1>, vector<1x3x1xf32>
    %64 = tpu.iota {dimensions = array<i32: 2>} : vector<1x1x16xi32>
    %65 = arith.sitofp %64 : vector<1x1x16xi32> to vector<1x1x16xf32>
    %cst_28 = arith.constant 4.000000e+00 : f32
    %66 = vector.broadcast %cst_28 : f32 to vector<1x1x16xf32>
    %67 = arith.divf %65, %66 : vector<1x1x16xf32>
    %68 = math.floor %67 : vector<1x1x16xf32>
    %cst_29 = arith.constant 4.000000e+00 : f32
    %69 = vector.broadcast %cst_29 : f32 to vector<1x1x16xf32>
    %70 = arith.mulf %68, %69 : vector<1x1x16xf32>
    %71 = arith.subf %65, %70 : vector<1x1x16xf32>
    %72 = vector.broadcast %71 : vector<1x1x16xf32> to vector<1x3x16xf32>
    %73 = vector.broadcast %38 : vector<1x3x1xf32> to vector<1x3x16xf32>
    %74 = arith.cmpf oge, %72, %73 : vector<1x3x16xf32>
    %75 = vector.broadcast %71 : vector<1x1x16xf32> to vector<1x3x16xf32>
    %76 = vector.broadcast %43 : vector<1x3x1xf32> to vector<1x3x16xf32>
    %77 = arith.cmpf olt, %75, %76 : vector<1x3x16xf32>
    %78 = arith.andi %74, %77 : vector<1x3x16xi1>
    %79 = vector.broadcast %68 : vector<1x1x16xf32> to vector<1x3x16xf32>
    %80 = vector.broadcast %46 : vector<1x3x1xf32> to vector<1x3x16xf32>
    %81 = arith.cmpf oge, %79, %80 : vector<1x3x16xf32>
    %82 = arith.andi %78, %81 : vector<1x3x16xi1>
    %83 = vector.broadcast %68 : vector<1x1x16xf32> to vector<1x3x16xf32>
    %84 = vector.broadcast %51 : vector<1x3x1xf32> to vector<1x3x16xf32>
    %85 = arith.cmpf olt, %83, %84 : vector<1x3x16xf32>
    %86 = arith.andi %82, %85 : vector<1x3x16xi1>
    %cst_30 = arith.constant 1.000000e+00 : f32
    %cst_31 = arith.constant 0.000000e+00 : f32
    %87 = vector.broadcast %cst_30 : f32 to vector<1x3x16xf32>
    %88 = vector.broadcast %cst_31 : f32 to vector<1x3x16xf32>
    %89 = arith.select %86, %87, %88 : vector<1x3x16xi1>, vector<1x3x16xf32>
    %90 = vector.broadcast %63 : vector<1x3x1xf32> to vector<1x3x16xf32>
    %91 = arith.mulf %89, %90 : vector<1x3x16xf32>
    %92 = vector.broadcast %71 : vector<1x1x16xf32> to vector<1x3x16xf32>
    %93 = vector.broadcast %54 : vector<1x3x1xf32> to vector<1x3x16xf32>
    %94 = arith.cmpf oeq, %92, %93 : vector<1x3x16xf32>
    %95 = vector.broadcast %68 : vector<1x1x16xf32> to vector<1x3x16xf32>
    %96 = vector.broadcast %57 : vector<1x3x1xf32> to vector<1x3x16xf32>
    %97 = arith.cmpf oeq, %95, %96 : vector<1x3x16xf32>
    %98 = arith.andi %94, %97 : vector<1x3x16xi1>
    %cst_32 = arith.constant 1.000000e+00 : f32
    %cst_33 = arith.constant 0.000000e+00 : f32
    %99 = vector.broadcast %cst_32 : f32 to vector<1x3x16xf32>
    %100 = vector.broadcast %cst_33 : f32 to vector<1x3x16xf32>
    %101 = arith.select %98, %99, %100 : vector<1x3x16xi1>, vector<1x3x16xf32>
    %102 = vector.broadcast %63 : vector<1x3x1xf32> to vector<1x3x16xf32>
    %103 = arith.mulf %101, %102 : vector<1x3x16xf32>
    %c0_34 = arith.constant 0 : index
    %c0_35 = arith.constant 0 : index
    %c0_36 = arith.constant 0 : index
    %c0_37 = arith.constant 0 : index
    %104 = vector.load %arg5[%c0_34, %c0_35, %c0_36, %c0_37] : memref<1x8x1x16xf32, #tpu.memory_space<vmem>>, vector<1x8x1x16xf32>
    %105 = vector.shape_cast %104 : vector<1x8x1x16xf32> to vector<8x1x16xf32>
    %106 = vector.extract_strided_slice %105 {offsets = [0, 0, 0], sizes = [2, 1, 16], strides = [1, 1, 1]} : vector<8x1x16xf32> to vector<2x1x16xf32>
    %cst_38 = arith.constant 8.000000e+00 : f32
    %107 = vector.broadcast %cst_38 : f32 to vector<2x1x16xf32>
    %108 = arith.mulf %106, %107 : vector<2x1x16xf32>
    %cst_39 = arith.constant 8.000000e+00 : f32
    %109 = vector.broadcast %cst_39 : f32 to vector<1x1x16xf32>
    %110 = arith.mulf %109, %71 : vector<1x1x16xf32>
    %111 = vector.broadcast %110 : vector<1x1x16xf32> to vector<2x1x16xf32>
    %112 = arith.addf %108, %111 : vector<2x1x16xf32>
    %113 = vector.extract_strided_slice %105 {offsets = [2, 0, 0], sizes = [2, 1, 16], strides = [1, 1, 1]} : vector<8x1x16xf32> to vector<2x1x16xf32>
    %cst_40 = arith.constant 8.000000e+00 : f32
    %114 = vector.broadcast %cst_40 : f32 to vector<2x1x16xf32>
    %115 = arith.mulf %113, %114 : vector<2x1x16xf32>
    %cst_41 = arith.constant 8.000000e+00 : f32
    %116 = vector.broadcast %cst_41 : f32 to vector<1x1x16xf32>
    %117 = arith.mulf %116, %68 : vector<1x1x16xf32>
    %118 = vector.broadcast %117 : vector<1x1x16xf32> to vector<2x1x16xf32>
    %119 = arith.addf %115, %118 : vector<2x1x16xf32>
    %120 = vector.extract_strided_slice %105 {offsets = [4, 0, 0], sizes = [2, 1, 16], strides = [1, 1, 1]} : vector<8x1x16xf32> to vector<2x1x16xf32>
    %cst_42 = arith.constant 3.200000e+01 : f32
    %121 = vector.broadcast %cst_42 : f32 to vector<2x1x16xf32>
    %122 = arith.mulf %120, %121 : vector<2x1x16xf32>
    %123 = vector.extract_strided_slice %105 {offsets = [6, 0, 0], sizes = [2, 1, 16], strides = [1, 1, 1]} : vector<8x1x16xf32> to vector<2x1x16xf32>
    %cst_43 = arith.constant 3.200000e+01 : f32
    %124 = vector.broadcast %cst_43 : f32 to vector<2x1x16xf32>
    %125 = arith.mulf %123, %124 : vector<2x1x16xf32>
    %cst_44 = arith.constant 5.000000e-01 : f32
    %126 = vector.broadcast %cst_44 : f32 to vector<2x1x16xf32>
    %127 = arith.mulf %126, %122 : vector<2x1x16xf32>
    %128 = arith.subf %112, %127 : vector<2x1x16xf32>
    %cst_45 = arith.constant 5.000000e-01 : f32
    %129 = vector.broadcast %cst_45 : f32 to vector<2x1x16xf32>
    %130 = arith.mulf %129, %122 : vector<2x1x16xf32>
    %131 = arith.addf %112, %130 : vector<2x1x16xf32>
    %cst_46 = arith.constant 5.000000e-01 : f32
    %132 = vector.broadcast %cst_46 : f32 to vector<2x1x16xf32>
    %133 = arith.mulf %132, %125 : vector<2x1x16xf32>
    %134 = arith.subf %119, %133 : vector<2x1x16xf32>
    %cst_47 = arith.constant 5.000000e-01 : f32
    %135 = vector.broadcast %cst_47 : f32 to vector<2x1x16xf32>
    %136 = arith.mulf %135, %125 : vector<2x1x16xf32>
    %137 = arith.addf %119, %136 : vector<2x1x16xf32>
    %138 = arith.mulf %122, %125 : vector<2x1x16xf32>
    %cst_48 = arith.constant 0.000000e+00 : f32
    %cst_49 = arith.constant 3.200000e+01 : f32
    %139 = vector.broadcast %cst_48 : f32 to vector<2x1x16xf32>
    %140 = arith.maximumf %139, %122 : vector<2x1x16xf32>
    %141 = vector.broadcast %cst_49 : f32 to vector<2x1x16xf32>
    %142 = arith.minimumf %141, %140 : vector<2x1x16xf32>
    %143 = math.sqrt %142 : vector<2x1x16xf32>
    %cst_50 = arith.constant 0.000000e+00 : f32
    %cst_51 = arith.constant 3.200000e+01 : f32
    %144 = vector.broadcast %cst_50 : f32 to vector<2x1x16xf32>
    %145 = arith.maximumf %144, %125 : vector<2x1x16xf32>
    %146 = vector.broadcast %cst_51 : f32 to vector<2x1x16xf32>
    %147 = arith.minimumf %146, %145 : vector<2x1x16xf32>
    %148 = math.sqrt %147 : vector<2x1x16xf32>
    %c0_52 = arith.constant 0 : index
    %c0_53 = arith.constant 0 : index
    %c0_54 = arith.constant 0 : index
    %c0_55 = arith.constant 0 : index
    %149 = vector.load %arg4[%c0_52, %c0_53, %c0_54, %c0_55] : memref<1x2x1x16xf32, #tpu.memory_space<vmem>>, vector<1x2x1x16xf32>
    %150 = vector.shape_cast %149 : vector<1x2x1x16xf32> to vector<2x1x16xf32>
    %151 = arith.mulf %150, %150 : vector<2x1x16xf32>
    %152 = vector.shape_cast %151 : vector<2x1x16xf32> to vector<1x2x1x16xf32>
    %cst_56 = arith.constant dense<0.000000e+00> : vector<1xf32>
    %153 = vector.multi_reduction <add>, %152, %cst_56 [1, 2, 3] : vector<1x2x1x16xf32> to vector<1xf32>
    %154 = vector.shape_cast %153 : vector<1xf32> to vector<1x1x1x1xf32>
    %155 = vector.extract %154[0, 0, 0, 0] : f32 from vector<1x1x1x1xf32>
    %156 = vector.broadcast %131 : vector<2x1x16xf32> to vector<2x3x16xf32>
    %157 = vector.broadcast %24 : vector<1x3x1xf32> to vector<2x3x16xf32>
    %158 = arith.minimumf %156, %157 : vector<2x3x16xf32>
    %159 = vector.broadcast %128 : vector<2x1x16xf32> to vector<2x3x16xf32>
    %160 = vector.broadcast %21 : vector<1x3x1xf32> to vector<2x3x16xf32>
    %161 = arith.maximumf %159, %160 : vector<2x3x16xf32>
    %162 = arith.subf %158, %161 : vector<2x3x16xf32>
    %cst_57 = arith.constant 0.000000e+00 : f32
    %163 = vector.broadcast %cst_57 : f32 to vector<2x3x16xf32>
    %164 = arith.maximumf %162, %163 : vector<2x3x16xf32>
    %165 = vector.broadcast %137 : vector<2x1x16xf32> to vector<2x3x16xf32>
    %166 = vector.broadcast %30 : vector<1x3x1xf32> to vector<2x3x16xf32>
    %167 = arith.minimumf %165, %166 : vector<2x3x16xf32>
    %168 = vector.broadcast %134 : vector<2x1x16xf32> to vector<2x3x16xf32>
    %169 = vector.broadcast %27 : vector<1x3x1xf32> to vector<2x3x16xf32>
    %170 = arith.maximumf %168, %169 : vector<2x3x16xf32>
    %171 = arith.subf %167, %170 : vector<2x3x16xf32>
    %cst_58 = arith.constant 0.000000e+00 : f32
    %172 = vector.broadcast %cst_58 : f32 to vector<2x3x16xf32>
    %173 = arith.maximumf %171, %172 : vector<2x3x16xf32>
    %174 = arith.mulf %164, %173 : vector<2x3x16xf32>
    %175 = vector.broadcast %138 : vector<2x1x16xf32> to vector<2x3x16xf32>
    %176 = vector.broadcast %31 : vector<1x3x1xf32> to vector<2x3x16xf32>
    %177 = arith.addf %175, %176 : vector<2x3x16xf32>
    %178 = arith.subf %177, %174 : vector<2x3x16xf32>
    %cst_59 = arith.constant 9.99999997E-7 : f32
    %179 = vector.broadcast %cst_59 : f32 to vector<2x3x16xf32>
    %180 = arith.addf %178, %179 : vector<2x3x16xf32>
    %181 = tpu.reciprocal %180 {approx = true} : vector<2x3x16xf32> -> vector<2x3x16xf32>
    %182 = arith.mulf %174, %181 : vector<2x3x16xf32>
    %cst_60 = arith.constant dense<0xFF800000> : vector<3x16xf32>
    %183 = vector.multi_reduction <maximumf>, %182, %cst_60 [0] : vector<2x3x16xf32> to vector<3x16xf32>
    %184 = vector.shape_cast %183 : vector<3x16xf32> to vector<1x3x16xf32>
    %185 = vector.broadcast %103 : vector<1x3x16xf32> to vector<2x3x16xf32>
    %186 = arith.mulf %182, %185 : vector<2x3x16xf32>
    %187 = vector.broadcast %184 : vector<1x3x16xf32> to vector<2x3x16xf32>
    %188 = arith.cmpf oge, %182, %187 : vector<2x3x16xf32>
    %cst_61 = arith.constant 1.000000e+00 : f32
    %cst_62 = arith.constant 0.000000e+00 : f32
    %189 = vector.broadcast %cst_61 : f32 to vector<2x3x16xf32>
    %190 = vector.broadcast %cst_62 : f32 to vector<2x3x16xf32>
    %191 = arith.select %188, %189, %190 : vector<2x3x16xi1>, vector<2x3x16xf32>
    %192 = vector.broadcast %103 : vector<1x3x16xf32> to vector<2x3x16xf32>
    %193 = arith.mulf %191, %192 : vector<2x3x16xf32>
    %c0_63 = arith.constant 0 : index
    %c0_64 = arith.constant 0 : index
    %c0_65 = arith.constant 0 : index
    %c0_66 = arith.constant 0 : index
    %194 = vector.load %arg3[%c0_63, %c0_64, %c0_65, %c0_66] : memref<1x4x1x16xf32, #tpu.memory_space<vmem>>, vector<1x4x1x16xf32>
    %195 = vector.shape_cast %194 : vector<1x4x1x16xf32> to vector<4x1x16xf32>
    %196 = tpu.iota {dimensions = array<i32: 0>} : vector<4x1x1xi32>
    %197 = vector.broadcast %196 : vector<4x1x1xi32> to vector<4x3x1xi32>
    %198 = vector.broadcast %18 : vector<1x3x1xi32> to vector<4x3x1xi32>
    %199 = arith.cmpi eq, %197, %198 : vector<4x3x1xi32>
    %cst_67 = arith.constant 1.000000e+00 : f32
    %cst_68 = arith.constant 0.000000e+00 : f32
    %200 = vector.broadcast %cst_67 : f32 to vector<4x3x1xf32>
    %201 = vector.broadcast %cst_68 : f32 to vector<4x3x1xf32>
    %202 = arith.select %199, %200, %201 : vector<4x3x1xi1>, vector<4x3x1xf32>
    %203 = vector.broadcast %195 : vector<4x1x16xf32> to vector<4x3x16xf32>
    %204 = vector.broadcast %202 : vector<4x3x1xf32> to vector<4x3x16xf32>
    %205 = arith.subf %203, %204 : vector<4x3x16xf32>
    %206 = vector.broadcast %91 : vector<1x3x16xf32> to vector<4x3x16xf32>
    %207 = arith.mulf %206, %205 : vector<4x3x16xf32>
    %208 = arith.mulf %207, %207 : vector<4x3x16xf32>
    %209 = vector.shape_cast %208 : vector<4x3x16xf32> to vector<1x4x3x16xf32>
    %cst_69 = arith.constant dense<0.000000e+00> : vector<1xf32>
    %210 = vector.multi_reduction <add>, %209, %cst_69 [1, 2, 3] : vector<1x4x3x16xf32> to vector<1xf32>
    %211 = vector.shape_cast %210 : vector<1xf32> to vector<1x1x1x1xf32>
    %212 = vector.extract %211[0, 0, 0, 0] : f32 from vector<1x1x1x1xf32>
    %cst_70 = arith.constant 1.000000e+00 : f32
    %213 = arith.mulf %cst_70, %212 : f32
    %214 = vector.broadcast %150 : vector<2x1x16xf32> to vector<2x3x16xf32>
    %215 = arith.subf %214, %186 : vector<2x3x16xf32>
    %216 = arith.mulf %193, %215 : vector<2x3x16xf32>
    %217 = arith.mulf %216, %216 : vector<2x3x16xf32>
    %218 = vector.shape_cast %217 : vector<2x3x16xf32> to vector<1x2x3x16xf32>
    %cst_71 = arith.constant dense<0.000000e+00> : vector<1xf32>
    %219 = vector.multi_reduction <add>, %218, %cst_71 [1, 2, 3] : vector<1x2x3x16xf32> to vector<1xf32>
    %220 = vector.shape_cast %219 : vector<1xf32> to vector<1x1x1x1xf32>
    %221 = vector.extract %220[0, 0, 0, 0] : f32 from vector<1x1x1x1xf32>
    %cst_72 = arith.constant 5.000000e-01 : f32
    %222 = arith.mulf %cst_72, %221 : f32
    %223 = arith.mulf %2, %155 : f32
    %224 = vector.broadcast %151 : vector<2x1x16xf32> to vector<2x3x16xf32>
    %225 = arith.mulf %193, %224 : vector<2x3x16xf32>
    %226 = vector.shape_cast %225 : vector<2x3x16xf32> to vector<1x2x3x16xf32>
    %cst_73 = arith.constant dense<0.000000e+00> : vector<1xf32>
    %227 = vector.multi_reduction <add>, %226, %cst_73 [1, 2, 3] : vector<1x2x3x16xf32> to vector<1xf32>
    %228 = vector.shape_cast %227 : vector<1xf32> to vector<1x1x1x1xf32>
    %229 = vector.extract %228[0, 0, 0, 0] : f32 from vector<1x1x1x1xf32>
    %230 = arith.subf %223, %229 : f32
    %cst_74 = arith.constant 2.500000e-01 : f32
    %231 = arith.mulf %cst_74, %230 : f32
    %232 = vector.broadcast %112 : vector<2x1x16xf32> to vector<2x3x16xf32>
    %233 = vector.broadcast %5 : vector<1x3x1xf32> to vector<2x3x16xf32>
    %234 = arith.subf %232, %233 : vector<2x3x16xf32>
    %235 = arith.mulf %193, %234 : vector<2x3x16xf32>
    %236 = vector.broadcast %119 : vector<2x1x16xf32> to vector<2x3x16xf32>
    %237 = vector.broadcast %8 : vector<1x3x1xf32> to vector<2x3x16xf32>
    %238 = arith.subf %236, %237 : vector<2x3x16xf32>
    %239 = arith.mulf %193, %238 : vector<2x3x16xf32>
    %240 = vector.broadcast %143 : vector<2x1x16xf32> to vector<2x3x16xf32>
    %241 = vector.broadcast %33 : vector<1x3x1xf32> to vector<2x3x16xf32>
    %242 = arith.subf %240, %241 : vector<2x3x16xf32>
    %243 = arith.mulf %193, %242 : vector<2x3x16xf32>
    %244 = vector.broadcast %148 : vector<2x1x16xf32> to vector<2x3x16xf32>
    %245 = vector.broadcast %35 : vector<1x3x1xf32> to vector<2x3x16xf32>
    %246 = arith.subf %244, %245 : vector<2x3x16xf32>
    %247 = arith.mulf %193, %246 : vector<2x3x16xf32>
    %248 = arith.mulf %235, %235 : vector<2x3x16xf32>
    %249 = vector.shape_cast %248 : vector<2x3x16xf32> to vector<1x2x3x16xf32>
    %cst_75 = arith.constant dense<0.000000e+00> : vector<1xf32>
    %250 = vector.multi_reduction <add>, %249, %cst_75 [1, 2, 3] : vector<1x2x3x16xf32> to vector<1xf32>
    %251 = vector.shape_cast %250 : vector<1xf32> to vector<1x1x1x1xf32>
    %252 = vector.extract %251[0, 0, 0, 0] : f32 from vector<1x1x1x1xf32>
    %253 = arith.mulf %239, %239 : vector<2x3x16xf32>
    %254 = vector.shape_cast %253 : vector<2x3x16xf32> to vector<1x2x3x16xf32>
    %cst_76 = arith.constant dense<0.000000e+00> : vector<1xf32>
    %255 = vector.multi_reduction <add>, %254, %cst_76 [1, 2, 3] : vector<1x2x3x16xf32> to vector<1xf32>
    %256 = vector.shape_cast %255 : vector<1xf32> to vector<1x1x1x1xf32>
    %257 = vector.extract %256[0, 0, 0, 0] : f32 from vector<1x1x1x1xf32>
    %258 = arith.addf %252, %257 : f32
    %cst_77 = arith.constant 7.812500e-03 : f32
    %259 = arith.mulf %cst_77, %258 : f32
    %260 = arith.mulf %243, %243 : vector<2x3x16xf32>
    %261 = vector.shape_cast %260 : vector<2x3x16xf32> to vector<1x2x3x16xf32>
    %cst_78 = arith.constant dense<0.000000e+00> : vector<1xf32>
    %262 = vector.multi_reduction <add>, %261, %cst_78 [1, 2, 3] : vector<1x2x3x16xf32> to vector<1xf32>
    %263 = vector.shape_cast %262 : vector<1xf32> to vector<1x1x1x1xf32>
    %264 = vector.extract %263[0, 0, 0, 0] : f32 from vector<1x1x1x1xf32>
    %265 = arith.mulf %247, %247 : vector<2x3x16xf32>
    %266 = vector.shape_cast %265 : vector<2x3x16xf32> to vector<1x2x3x16xf32>
    %cst_79 = arith.constant dense<0.000000e+00> : vector<1xf32>
    %267 = vector.multi_reduction <add>, %266, %cst_79 [1, 2, 3] : vector<1x2x3x16xf32> to vector<1xf32>
    %268 = vector.shape_cast %267 : vector<1xf32> to vector<1x1x1x1xf32>
    %269 = vector.extract %268[0, 0, 0, 0] : f32 from vector<1x1x1x1xf32>
    %270 = arith.addf %264, %269 : f32
    %cst_80 = arith.constant 1.562500e-02 : f32
    %271 = arith.mulf %cst_80, %270 : f32
    %272 = arith.addf %259, %271 : f32
    %cst_81 = arith.constant 5.000000e+00 : f32
    %273 = arith.mulf %cst_81, %272 : f32
    %274 = arith.addf %213, %222 : f32
    %275 = arith.addf %274, %231 : f32
    %276 = arith.addf %275, %273 : f32
    %cst_82 = arith.constant 0.000000e+00 : f32
    %277 = vector.broadcast %cst_82 : f32 to vector<1x1x1xf32>
    %278 = vector.broadcast %276 : f32 to vector<1x1x1xf32>
    %279 = arith.addf %277, %278 : vector<1x1x1xf32>
    %c0_83 = arith.constant 0 : index
    %c0_84 = arith.constant 0 : index
    %c0_85 = arith.constant 0 : index
    %280 = vector.load %arg6[%c0_83, %c0_84, %c0_85] : memref<1x1x1xf32, #tpu.memory_space<vmem>>, vector<1x1x1xf32>
    tpu.vector_store %arg6[%c0_83, %c0_84, %c0_85], %279 {strides = array<i32>} : memref<1x1x1xf32, #tpu.memory_space<vmem>>, vector<1x1x1xf32>,
    return
  }
  func.func @transform_0(%arg0: i32) -> i32 {
    %c0_i32 = arith.constant 0 : i32
    %c0_i32_0 = arith.constant 0 : i32
    return %c0_i32 : i32
  }
  func.func @transform_1(%arg0: i32) -> (i32, i32, i32, i32) {
    %c0_i32 = arith.constant 0 : i32
    %c0_i32_0 = arith.constant 0 : i32
    %c0_i32_1 = arith.constant 0 : i32
    %c0_i32_2 = arith.constant 0 : i32
    return %arg0, %c0_i32, %c0_i32_0, %c0_i32_1 : i32, i32, i32, i32
  }
  func.func @transform_2(%arg0: i32) -> (i32, i32, i32, i32) {
    %c0_i32 = arith.constant 0 : i32
    %c0_i32_0 = arith.constant 0 : i32
    %c0_i32_1 = arith.constant 0 : i32
    %c0_i32_2 = arith.constant 0 : i32
    return %arg0, %c0_i32, %c0_i32_0, %c0_i32_1 : i32, i32, i32, i32
  }
  func.func @transform_3(%arg0: i32) -> (i32, i32, i32, i32) {
    %c0_i32 = arith.constant 0 : i32
    %c0_i32_0 = arith.constant 0 : i32
    %c0_i32_1 = arith.constant 0 : i32
    %c0_i32_2 = arith.constant 0 : i32
    return %arg0, %c0_i32, %c0_i32_0, %c0_i32_1 : i32, i32, i32, i32
  }
  func.func @transform_4(%arg0: i32) -> (i32, i32, i32, i32) {
    %c0_i32 = arith.constant 0 : i32
    %c0_i32_0 = arith.constant 0 : i32
    %c0_i32_1 = arith.constant 0 : i32
    %c0_i32_2 = arith.constant 0 : i32
    return %arg0, %c0_i32, %c0_i32_0, %c0_i32_1 : i32, i32, i32, i32
  }
  func.func @transform_5(%arg0: i32) -> (i32, i32, i32) {
    %c0_i32 = arith.constant 0 : i32
    %c0_i32_0 = arith.constant 0 : i32
    %c0_i32_1 = arith.constant 0 : i32
    return %arg0, %c0_i32, %c0_i32_0 : i32, i32, i32
  }
}

</mosaic_0001>

<bundles_post_ra>
// kernel: yolo_loss.1
= control target key start
LH: loop header
LB: loop body
LE: loop exit
PB: predicated region body
PF: predicated region fallthrough
CT: control target
= control target key end

     0   :  { %10 = vsyncpa [#allocation3], 0  ;;  %s1148_s18 = smov 0   ;;  %s1403_s0 = inlined_call_operand.vmem [shape: s32[2], index: 0, kind: input, shape index: {}]   ;;  %s1404_s1 = inlined_call_operand.vmem [shape: f32[2,5,3,1], index: 1, kind: input, shape index: {}]   ;;  %s1405_s2 = inlined_call_operand.vmem [shape: f32[2,4,1,16], index: 2, kind: input, shape index: {}]   ;;  %s1406_s3 = inlined_call_operand.vmem [shape: f32[2,2,1,16], index: 3, kind: input, shape index: {}]   ;;  %s1407_s4 = inlined_call_operand.vmem [shape: f32[2,8,1,16], index: 4, kind: input, shape index: {}]   ;;  %s1408_s5 = inlined_call_operand.vmem [shape: f32[2,1,1], index: 5, kind: output, shape index: {}]  }
   0x1 LB: > { %s1154_s19 = sadd.s32 4294967295, %s1113_s18   ;;  %p1001_p0 = scmp.ge.s32.totalorder %s1113_s18, 1  ;;  %s1113_s18 = sphi %s1148_s18, %s16_s18  }
   0x2   : > { %p172_p1 = scmp.lt.s32.totalorder %s1113_s18, 3  ;;  %s185_s22 = sshll.u32 %s1403_s0, 4  ;;  %s186_s22 = int_to_ptr.vmem [resolvable:$true] %s185_s22 }
   0x3   : > { %p1047_p3 = scmp.eq.s32.totalorder %s1154_s19, 0  ;;  %s1088_s24 = scalar_lea.vmem %s186_s22, 16 }
   0x4   : > { %p1161_p2 = pnand %p1001_p0, %p172_p1  ;;  %p1089_p6 = scmp.ne.s32.totalorder %s186_s22, %s1088_s24 }
   0x5   : > { %p1096_p10 = scmp.lt.s32.totalorder %s186_s22, %s186_s22  ;;  %p1097_p11 = scmp.lt.s32.totalorder %s1088_s24, %s1088_s24 }
   0x6   : > { %p1043_p4 = pneg %p1161_p2 }
   0x7   : > { %p1098_p12 = por %p1097_p11, %p1096_p10 }
   0x8   : > { %p1044_p5 = pnand %p1047_p3, %p1043_p4 }
   0xa   : > { %p1090_p7 = pneg %p1044_p5 }
   0xc   : > { %p1091_p8 = pnand %p1090_p7, %p1089_p6 }
   0xe   : > { %p1092_p9 = pneg %p1091_p8 }
  0x10   : > { %p1099_p13 = pnand %p1098_p12, %p1092_p9 }
  0x12   : > { %1102 = shalt.err (!%p1099_p13)
}
  0x13   : > { %s1115_s25 = smov [#allocation2]   ;;  %227 = sbr.rel (%p1161_p2) target bundleno = 441 (0x1b9), region = 40 }
  0x14   : > { %1046 = dma.vmem_to_smem (!%p1044_p5), %s186_s22, 16, %s1115_s25, [#allocation3]  }
  0x1a   : > { %1108 = dma.done.wait (%p1047_p3), [#allocation3], 16  }
  0x1b   : > { %1110 = vsyncadd (%p1047_p3), [#allocation3], 4294967280 }
  0x1c   : > { %233 = sfence }
  0x1d   : > { %p266_p0 = scmp.lt.s32.totalorder %s1154_s19, 1  ;;  %v1116_v0 = vmov 0   ;;  %v1117_v30 = vmov 0.0   ;;  %vm469_vm8 = vcmask 122880   ;;  %v336_v55 = vlaneseq  ;;  %s1253_s14 = sld [smem:[#allocation2 + %s1154_s19]] }
  0x1e   : > { %1061 = vset.pattern.permute.xlu1 %v1116_v0  ;;  %1060 = vset.pattern.permute.xlu0 %v1116_v0 }
  0x1f   : > { %s1178_s26 = scalar_select %p266_p0, %s1154_s19, 1  ;;  %v342_v56 = vand.u32 127, %v336_v55 }
  0x21   : > { %s1020_s27 = smul.u32 20, %s1178_s26  ;;  %s1008_s6 = sshll.u32 %s1178_s26, 1  ;;  %v343_v57 = vcvt.s32.f32 %v342_v56 }
  0x22   : > { %s278_s9 = scalar_lea.vmem %s1406_s3, %s1008_s6  ;;  %s1009_s10 = sshll.u32 %s1178_s26, 3 }
  0x23   : > { %s270_s30 = scalar_lea.vmem %s1404_s1, %s1020_s27  ;;  %v1198_v48 = vld [vmem:[%s278_s9] sm:$0x1]  ;;  %v1200_v49 = vld [vmem:[%s278_s9 + $0x1] sm:$0x1]  ;;  %v345_v58 = vmul.f32 0.25, %v343_v57  ;;  %s282_s13 = scalar_lea.vmem %s1407_s4, %s1009_s10 }
  0x24   : > { %v1184_v1 = vld [vmem:[%s270_s30 + $0x4] sm:$0x7]  ;;  %v1012_v2 = vld [vmem:[%s270_s30 + $0xc] sm:$0x7]  ;;  %v288_v4 = vld [vmem:[%s270_s30] sm:$0x7]  ;;  %v1204_v50 = vmul.f32 %v1198_v48, %v1198_v48  ;;  %v1208_v51 = vmul.f32 %v1200_v49, %v1200_v49  ;;  %s287_s21 = scvt.s32.f32 %s1253_s14 }
  0x25   : > { %v301_v3 = vmul.f32 0.5, %v1012_v2  ;;  %v1011_v5 = vld [vmem:[%s270_s30 + $0x8] sm:$0x7]  ;;  %v1013_v9 = vld [vmem:[%s270_s30 + $0x10] sm:$0x7]  ;;  %v332_v11 = vmul.f32 0.125, %v288_v4  ;;  %v1212_v59 = vfloor.f32 %v345_v58 }
  0x26   : > { %v298_v6 = vmul.f32 0.5, %v1011_v5  ;;  %v305_v12 = vand.u32 2147483647, %v1011_v5  ;;  %v1021_v15 = vtrunc.f32 %v1013_v9  ;;  %v304_v20 = vmul.f32 %v1012_v2, %v1011_v5  ;;  %v395_v61 = vld [vmem:[%s282_s13 + $0x2] sm:$0x1]  ;;  %s1007_s15 = sshll.u32 %s1178_s26, 2 }
  0x27   : > { %v303_v7 = vadd.f32 %v1184_v1, %v301_v3  ;;  %v302_v10 = vsub.f32 %v1184_v1, %v301_v3  ;;  %v333_v16 = vfloor.f32 %v332_v11  ;;  %v313_v21 = vand.u32 2147483647, %v1012_v2  ;;  %v396_v62 = vld [vmem:[%s282_s13 + $0x3] sm:$0x1]  ;;  %v399_v63 = vld [vmem:[%s282_s13 + $0x6] sm:$0x1]  ;;  %s1285_s19 = scalar_lea.vmem %s1405_s2, %s1007_s15 }
  0x28   : > { %v300_v8 = vadd.f32 %v298_v6, %v288_v4  ;;  %v299_v14 = vsub.f32 %v288_v4, %v298_v6  ;;  %1072 = vrsqrt.f32 %v305_v12  ;;  %v1022_v22 = vcvt.f32.s32 %v1021_v15  ;;  %v400_v0 = vld [vmem:[%s282_s13 + $0x7] sm:$0x1]  ;;  %v393_v2 = vld [vmem:[%s282_s13] sm:$0x1]  ;;  %v394_v3 = vld [vmem:[%s282_s13 + $0x1] sm:$0x1] }
  0x29   : > { %538 = vperm.xlu1 %1061, %v303_v7   ;;  %v329_v18 = vmul.f32 0.125, %v303_v7  ;;  %v327_v24 = vmul.f32 0.125, %v302_v10  ;;  %1074 = vrsqrt.f32 %v313_v21  ;;  %v334_v29 = vmul.f32 0.125, %v1184_v1  ;;  %v398_v5 = vld [vmem:[%s282_s13 + $0x5] sm:$0x1] }
  0x2a   : > { %496 = vperm.xlu0 %1060, %v300_v8   ;;  %v324_v13 = vmul.f32 0.125, %v300_v8  ;;  %v322_v17 = vmul.f32 0.125, %v299_v14  ;;  %vm611_vm0 = vcmp.eq.s32.totalorder %v1022_v22, 0  ;;  %vm612_vm1 = vcmp.eq.s32.totalorder %v1022_v22, 1 }
  0x2b   : > { %v330_v25 = vceil.f32 %v329_v18  ;;  %v328_v27 = vfloor.f32 %v327_v24  ;;  %v615_v31 = vsel %vm611_vm0, 1.0, %v1117_v30  ;;  %v616_v32 = vsel %vm612_vm1, 1.0, %v1117_v30 }
  0x2c   : > { %v325_v19 = vceil.f32 %v324_v13  ;;  %v323_v23 = vfloor.f32 %v322_v17  ;;  %vm613_vm2 = vcmp.eq.s32.totalorder %v1022_v22, 2  ;;  %vm614_vm3 = vcmp.eq.s32.totalorder %v1022_v22, 3 }
  0x2d   : > { %557 = vperm.xlu1 %1061, %v302_v10   ;;  %v331_v28 = vmin.f32 %v330_v25, 4.0  ;;  %v1062_v34 = vpack.i.bf16 %v616_v32, %v615_v31  ;;  %v335_v35 = vfloor.f32 %v334_v29  ;;  %v617_v36 = vsel %vm613_vm2, 1.0, %v1117_v30 }
  0x2e   : > { %515 = vperm.xlu0 %1060, %v299_v14   ;;  %v326_v26 = vmin.f32 %v325_v19, 4.0  ;;  %v618_v37 = vsel %vm614_vm3, 1.0, %v1117_v30  ;;  %vm308_vm4 = vcmp.eq.f32.partialorder %v305_v12, inf  ;;  %v311_v41 = vand.u32 2147483648, %v305_v12 }
  0x2f   : > { %v1067_v40 = vpack.i.bf16 %v618_v37, %v617_v36  ;;  %vm310_vm5 = vcmp.eq.f32.partialorder %v305_v12, 0.0  ;;  %vm316_vm6 = vcmp.eq.f32.partialorder %v313_v21, inf  ;;  %v319_v45 = vand.u32 2147483648, %v313_v21 }
  0x30   : > { %vm318_vm7 = vcmp.eq.f32.partialorder %v313_v21, 0.0  ;;  %v470_v52 = vsel %vm469_vm8, %v1204_v50, 0.0  ;;  %v471_v53 = vsel %vm469_vm8, %v1208_v51, 0.0  ;;  %v347_v60 = vmul.f32 4.0, %v1212_v59 }
  0x31   : > { %380 = vperm.xlu1 %1061, %v333_v16   ;;  %v472_v54 = vadd.f32 %v471_v53, %v470_v52  ;;  %v406_v6 = vmul.f32 8.0, %v395_v61  ;;  %v407_v7 = vmul.f32 8.0, %v396_v62  ;;  %v408_v8 = vmul.f32 8.0, %v1212_v59 }
  0x32   : > { %582 = vperm.xlu0 %1060, %v304_v20   ;;  %v1073_v33 = vpop.eup %1072  ;;  %v413_v9 = vmul.f32 32.0, %v399_v63  ;;  %v414_v10 = vmul.f32 32.0, %v400_v0  ;;  %v401_v11 = vmul.f32 8.0, %v393_v2  ;;  %v412_v15 = vmul.f32 32.0, %v398_v5 }
  0x33   : > { %v307_v38 = vmul.f32 %v1073_v33, %v305_v12  ;;  %v1075_v39 = vpop.eup %1074  ;;  %v1223_v16 = vshrl.u32 %v336_v55, 7  ;;  %v1225_v17 = vadd.f32 %v408_v8, %v406_v6  ;;  %v1227_v18 = vadd.f32 %v408_v8, %v407_v7 }
  0x34   : > { %v315_v43 = vmul.f32 %v1075_v39, %v313_v21  ;;  %v421_v19 = vmul.f32 0.5, %v413_v9  ;;  %v422_v20 = vmul.f32 0.5, %v414_v10  ;;  %v416_v24 = vmul.f32 0.5, %v412_v15 }
  0x35   : > { %351 = vperm.xlu1 %1061, %v323_v23   ;;  %v309_v42 = vsel %vm308_vm4, %v305_v12, %v307_v38  ;;  %v402_v12 = vmul.f32 8.0, %v394_v3  ;;  %v1234_v25 = vsub.s32 0, %v1223_v16  ;;  %v447_v36 = vmax.f32 %v413_v9, 0.0 }
  0x36   : > { %357 = vperm.xlu0 %1060, %v326_v26   ;;  %v312_v44 = vsel %vm310_vm5, %v311_v41, %v309_v42  ;;  %v317_v46 = vsel %vm316_vm6, %v313_v21, %v315_v43  ;;  %v425_v26 = vadd.f32 %v421_v19, %v1225_v17  ;;  %v424_v29 = vsub.f32 %v1227_v18, %v422_v20 }
  0x37   : > { %v320_v47 = vsel %vm318_vm7, %v319_v45, %v317_v46  ;;  %v448_v37 = vmax.f32 %v414_v10, 0.0  ;;  %v430_v39 = vmax.f32 %v412_v15, 0.0  ;;  %v1257_v55 = vmin.f32 %v447_v36, 32.0 }
  0x38   : > { %vm595_vm1 = vcmask 124928  }
  0x39   : > { %364 = vperm.xlu1 %1061, %v328_v27   ;;  %v426_v27 = vadd.f32 %v422_v20, %v1227_v18  ;;  %v1259_v56 = vmin.f32 %v448_v37, 32.0  ;;  %vm453_vm6 = vcmp.eq.f32.partialorder %v1257_v55, inf  ;;  %vm455_vm7 = vcmp.eq.f32.partialorder %v1257_v55, 0.0 }
  0x3a   : > { %371 = vperm.xlu0 %1060, %v331_v28   ;;  %v423_v28 = vsub.f32 %v1225_v17, %v421_v19 }
  0x3b   : > { %v533_v41 = vrot.slane %v426_v27, %v1234_v25  ;;  %vm460_vm8 = vcmp.eq.f32.partialorder %v1259_v56, inf }
  0x3c   : > { %v548_v43 = vrot.slane %v423_v28, %v1234_v25 }
  0x3d   : > { %1063 = vperm.xlu1 %1061, %v1062_v34  }
  0x3e   : > { %386 = vperm.xlu0 %1060, %v335_v35  }
  0x41   : > { %765 = vperm.xlu1 %1061, %v288_v4   ;;  %v397_v4 = vld [vmem:[%s282_s13 + $0x4] sm:$0x1] }
  0x42   : > { %1068 = vperm.xlu0 %1060, %v1067_v40   ;;  %v411_v14 = vmul.f32 32.0, %v397_v4  ;;  %v529_v40 = vrot.slane %v425_v26, %v1234_v25 }
  0x44   : > { %v415_v23 = vmul.f32 0.5, %v411_v14  ;;  %v429_v35 = vmax.f32 %v411_v14, 0.0 }
  0x45   : > { %807 = vperm.xlu1 %1061, %v312_v44   ;;  %v552_v44 = vrot.slane %v424_v29, %v1234_v25 }
  0x46   : > { %786 = vperm.xlu0 %1060, %v1184_v1   ;;  %v1219_v1 = vsub.f32 %v343_v57, %v347_v60  ;;  %v1255_v53 = vmin.f32 %v429_v35, 32.0  ;;  %v1261_v57 = vmin.f32 %v430_v39, 32.0  ;;  %v428_v60 = vmul.f32 %v414_v10, %v412_v15 }
  0x48   : > { %v403_v13 = vmul.f32 8.0, %v1219_v1  ;;  %1076 = vrsqrt.f32 %v1255_v53  ;;  %v577_v10 = vrot.slane %v428_v60, %v1234_v25  ;;  %vm435_vm0 = vcmp.eq.f32.partialorder %v1255_v53, inf }
  0x49   : > { %1078 = vrsqrt.f32 %v1261_v57  ;;  %vm442_vm3 = vcmp.eq.f32.partialorder %v1261_v57, inf  ;;  %v777_v60 = vrot.slane %v1225_v17, %v1234_v25  ;;  %vm437_vm4 = vcmp.eq.f32.partialorder %v1255_v53, 0.0 }
  0x4a   : > { %828 = vperm.xlu0 %1060, %v320_v47   ;;  %v1229_v21 = vadd.f32 %v403_v13, %v401_v11  ;;  %v1231_v22 = vadd.f32 %v403_v13, %v402_v12  ;;  %1080 = vrsqrt.f32 %v1257_v55  ;;  %vm444_vm5 = vcmp.eq.f32.partialorder %v1261_v57, 0.0 }
  0x4b   : > { %1082 = vrsqrt.f32 %v1259_v56 }
  0x4c   : > { %v419_v31 = vadd.f32 %v415_v23, %v1229_v21  ;;  %v420_v32 = vadd.f32 %v416_v24, %v1231_v22  ;;  %v417_v33 = vsub.f32 %v1229_v21, %v415_v23  ;;  %v418_v34 = vsub.f32 %v1231_v22, %v416_v24 }
  0x4d   : > { %v338_v24 = vstv %s1253_s14 }
  0x4e   : > { %v487_v45 = vrot.slane %v419_v31, %v1234_v25  ;;  %v491_v46 = vrot.slane %v420_v32, %v1234_v25  ;;  %v506_v47 = vrot.slane %v417_v33, %v1234_v25  ;;  %v510_v52 = vrot.slane %v418_v34, %v1234_v25 }
  0x4f   : > { %vm339_vm9 = vcmp.lt.s32.totalorder %v1223_v16, %v338_v24 }
  0x50   : > { %v1288_v39 = vsel %vm339_vm9, 1.0, %v1117_v30  ;;  %vm462_vm9 = vcmp.eq.f32.partialorder %v1259_v56, 0.0 }
  0x69   : > { %473 = vadd.xlane.f32.xlu1 %v472_v54  ;;  %v427_v54 = vmul.f32 %v413_v9, %v411_v14 }
  0x6b   : > { %v573_v9 = vrot.slane %v427_v54, %v1234_v25  ;;  %v1015_v54 = vld [vmem:[%s1285_s19 + $0x1] ss:$0 sm:$0xff] }
  0xa8   : > { %v539_v38 = vpop.permute.xlu1 %538 }
  0xa9   : > { %v497_v42 = vpop.permute.xlu0 %496  ;;  %v541_v61 = vmin.f32 %v529_v40, %v539_v38  ;;  %v542_v62 = vmin.f32 %v533_v41, %v539_v38  ;;  %v1077_v38 = vpop.eup %1076  ;;  %v756_v40 = vrot.slane %v1229_v21, %v1234_v25 }
  0xaa   : > { %v499_v3 = vmin.f32 %v487_v45, %v497_v42  ;;  %v500_v4 = vmin.f32 %v491_v46, %v497_v42  ;;  %v1079_v41 = vpop.eup %1078  ;;  %v760_v42 = vrot.slane %v1231_v22, %v1234_v25  ;;  %v438_v45 = vand.u32 2147483648, %v1255_v53 }
  0xab   : > { %v445_v46 = vand.u32 2147483648, %v1261_v57 }
  0xac   : > { %v558_v58 = vpop.permute.xlu1 %557 }
  0xad   : > { %v560_v63 = vmax.f32 %v548_v43, %v558_v58  ;;  %v561_v0 = vmax.f32 %v552_v44, %v558_v58  ;;  %v516_v2 = vpop.permute.xlu0 %515  ;;  %v1081_v43 = vpop.eup %1080  ;;  %v1014_v44 = vld [vmem:[%s1285_s19] ss:$0 sm:$0xff] }
  0xae   : > { %v518_v5 = vmax.f32 %v506_v47, %v516_v2  ;;  %v519_v6 = vmax.f32 %v510_v52, %v516_v2  ;;  %v1083_v47 = vpop.eup %1082  ;;  %v434_v2 = vmul.f32 %v1077_v38, %v1255_v53  ;;  %v700_v38 = vrot.slane %v1200_v49, %v1234_v25 }
  0xaf   : > { %v562_v7 = vsub.f32 %v541_v61, %v560_v63  ;;  %v563_v8 = vsub.f32 %v542_v62, %v561_v0  ;;  %v781_v0 = vrot.slane %v1227_v18, %v1234_v25 }
  0xb0   : > { %v520_v11 = vsub.f32 %v499_v3, %v518_v5  ;;  %v521_v12 = vsub.f32 %v500_v4, %v519_v6  ;;  %v1265_v13 = vpop.permute.xlu1 %380  ;;  %v441_v3 = vmul.f32 %v1079_v41, %v1261_v57  ;;  %v452_v4 = vmul.f32 %v1081_v43, %v1257_v55 }
  0xb1   : > { %v564_v14 = vmax.f32 %v562_v7, 0.0  ;;  %v565_v15 = vmax.f32 %v563_v8, 0.0  ;;  %v583_v19 = vpop.permute.xlu0 %582  ;;  %v456_v5 = vand.u32 2147483648, %v1257_v55 }
  0xb2   : > { %v522_v20 = vmax.f32 %v520_v11, 0.0  ;;  %v523_v23 = vmax.f32 %v521_v12, 0.0  ;;  %v585_v28 = vadd.f32 %v583_v19, %v573_v9  ;;  %v586_v29 = vadd.f32 %v583_v19, %v577_v10 }
  0xb3   : > { %v459_v9 = vmul.f32 %v1083_v47, %v1259_v56  ;;  %v463_v11 = vand.u32 2147483648, %v1259_v56 }
  0xb4   : > { %v1272_v26 = vmul.f32 %v564_v14, %v522_v20  ;;  %v1274_v27 = vmul.f32 %v565_v15, %v523_v23  ;;  %v352_v31 = vpop.permute.xlu1 %351  ;;  %v1016_v14 = vld [vmem:[%s1285_s19 + $0x2] ss:$0 sm:$0xff]  ;;  %v1017_v15 = vld [vmem:[%s1285_s19 + $0x3] ss:$0 sm:$0xff]  ;;  %v436_v20 = vsel %vm435_vm0, %v1255_v53, %v434_v2 }
  0xb5   : > { %v358_v32 = vpop.permute.xlu0 %357  ;;  %vm354_vm11 = vcmp.ge.f32.partialorder %v1219_v1, %v352_v31 }
  0xb6   : > { %v587_v33 = vsub.f32 %v585_v28, %v1272_v26  ;;  %v588_v34 = vsub.f32 %v586_v29, %v1274_v27  ;;  %vm360_vm10 = vcmp.lt.f32.partialorder %v1219_v1, %v358_v32  ;;  %v443_v28 = vsel %vm442_vm3, %v1261_v57, %v441_v3 }
  0xb7   : > { %vm361_vm12 = vmand %vm354_vm11, %vm360_vm10  ;;  %v454_v29 = vsel %vm453_vm6, %v1257_v55, %v452_v4  ;;  %vm383_vm11 = vcmp.eq.f32.partialorder %v1219_v1, %v1265_v13  ;;  %v439_v13 = vsel %vm437_vm4, %v438_v45, %v436_v20  ;;  %v446_v41 = vsel %vm444_vm5, %v445_v46, %v443_v28 }
  0xb8   : > { %v589_v35 = vadd.f32 1e-06, %v587_v33  ;;  %v590_v36 = vadd.f32 1e-06, %v588_v34  ;;  %v365_v37 = vpop.permute.xlu1 %364  ;;  %v461_v33 = vsel %vm460_vm8, %v1259_v56, %v459_v9  ;;  %v732_v20 = vrot.slane %v1208_v51, %v1234_v25 }
  0xb9   : > { %v372_v16 = vpop.permute.xlu0 %371  ;;  %vm367_vm13 = vcmp.ge.f32.partialorder %v1212_v59, %v365_v37  ;;  %v696_v37 = vrot.slane %v1198_v48, %v1234_v25  ;;  %v464_v48 = vsel %vm462_vm9, %v463_v11, %v461_v33 }
  0xba   : > { %1084 = vrcp.f32 %v589_v35  ;;  %vm374_vm14 = vcmp.lt.f32.partialorder %v1212_v59, %v372_v16  ;;  %vm368_vm15 = vmand %vm361_vm12, %vm367_vm13  ;;  %v823_v3 = vrot.slane %v464_v48, %v1234_v25 }
  0xbb   : > { %1086 = vrcp.f32 %v590_v36  ;;  %vm375_vm2 = vmand %vm368_vm15, %vm374_vm14  ;;  %vm902_vm15 = vcmask 0  }
  0xbc   : > { %v376_v52 = vsel %vm375_vm2, 1.0, %v1117_v30  ;;  %v1064_v58 = vpop.permute.xlu1 %1063 }
  0xbd   : > { %v387_v61 = vpop.permute.xlu0 %386  ;;  %v1066_v62 = vunpack.i.h.bf16 %v1064_v58  ;;  %v1065_v63 = vunpack.i.l.bf16 %v1064_v58  ;;  %v377_v6 = vmul.f32 %v376_v52, %v1288_v39 }
  0xbe   : > { %vm389_vm10 = vcmp.eq.f32.partialorder %v1212_v59, %v387_v61  ;;  %v457_v59 = vsel %vm455_vm7, %v456_v5, %v454_v29 }
  0xbf   : > { %v664_v7 = vsub.f32 %v1015_v54, %v1066_v62  ;;  %v663_v8 = vsub.f32 %v1014_v44, %v1065_v63  ;;  %vm390_vm12 = vmand %vm383_vm11, %vm389_vm10  ;;  %v802_v54 = vrot.slane %v446_v41, %v1234_v25  ;;  %v819_v58 = vrot.slane %v457_v59, %v1234_v25 }
  0xc0   : > { %v766_v52 = vpop.permute.xlu1 %765 }
  0xc1   : > { %v668_v12 = vmul.f32 %v664_v7, %v377_v6  ;;  %v667_v10 = vmul.f32 %v663_v8, %v377_v6  ;;  %v1069_v19 = vpop.permute.xlu0 %1068  ;;  %v769_v18 = vsub.f32 %v760_v42, %v766_v52 }
  0xc2   : > { %v1071_v23 = vunpack.i.h.bf16 %v1069_v19  ;;  %v1070_v24 = vunpack.i.l.bf16 %v1069_v19 }
  0xc3   : > { %v672_v31 = vmul.f32 %v668_v12, %v668_v12  ;;  %v671_v32 = vmul.f32 %v667_v10, %v667_v10 }
  0xc4   : > { %v1085_v34 = vpop.eup %1084  ;;  %v666_v35 = vsub.f32 %v1017_v15, %v1071_v23  ;;  %v665_v36 = vsub.f32 %v1016_v14, %v1070_v24  ;;  %v768_v14 = vsub.f32 %v756_v40, %v766_v52 }
  0xc5   : > { %v1087_v16 = vpop.eup %1086  ;;  %v593_v1 = vmul.f32 %v1085_v34, %v1272_v26  ;;  %v675_v49 = vsel %vm595_vm1, %v671_v32, 0.0  ;;  %v391_v26 = vsel %vm390_vm12, 1.0, %v1117_v30  ;;  %v787_v53 = vpop.permute.xlu0 %786  ;;  %v676_v57 = vsel %vm595_vm1, %v672_v31, 0.0 }
  0xc6   : > { %v594_v43 = vmul.f32 %v1087_v16, %v1274_v27  ;;  %v669_v44 = vmul.f32 %v665_v36, %v377_v6  ;;  %v670_v45 = vmul.f32 %v666_v35, %v377_v6  ;;  %v798_v27 = vrot.slane %v439_v13, %v1234_v25 }
  0xc7   : > { %v596_v47 = vsel %vm595_vm1, %v593_v1, -inf  ;;  %v677_v62 = vadd.f32 %v676_v57, %v675_v49  ;;  %v392_v63 = vmul.f32 %v391_v26, %v1288_v39  ;;  %v789_v2 = vsub.f32 %v777_v60, %v787_v53 }
  0xc8   : > { %v597_v46 = vsel %vm595_vm1, %v594_v43, -inf  ;;  %v673_v55 = vmul.f32 %v669_v44, %v669_v44  ;;  %v674_v61 = vmul.f32 %v670_v45, %v670_v45  ;;  %v790_v5 = vsub.f32 %v781_v0, %v787_v53  ;;  %v808_v0 = vpop.permute.xlu1 %807 }
  0xc9   : > { %v598_v56 = vmax.f32 %v596_v47, %v597_v46  ;;  %v599_v9 = vmul.f32 %v593_v1, %v392_v63  ;;  %v829_v11 = vpop.permute.xlu0 %828  ;;  %v600_v10 = vmul.f32 %v594_v43, %v392_v63  ;;  %v810_v21 = vsub.f32 %v798_v27, %v808_v0 }
  0xca   : > { %v678_v4 = vsel %vm595_vm1, %v673_v55, 0.0  ;;  %v680_v39 = vsel %vm595_vm1, %v674_v61, 0.0  ;;  %v831_v28 = vsub.f32 %v819_v58, %v829_v11  ;;  %v832_v29 = vsub.f32 %v823_v3, %v829_v11 }
  0xcb   : > { %vm601_vm13 = vcmp.ge.f32.partialorder %v593_v1, %v598_v56  ;;  %vm602_vm14 = vcmp.ge.f32.partialorder %v594_v43, %v598_v56  ;;  %v679_v6 = vadd.f32 %v678_v4, %v677_v62  ;;  %v811_v40 = vsub.f32 %v802_v54, %v808_v0 }
  0xcc   : > { %v603_v7 = vsel %vm601_vm13, 1.0, %v1117_v30  ;;  %v604_v8 = vsel %vm602_vm14, 1.0, %v1117_v30  ;;  %v728_v30 = vrot.slane %v1204_v50, %v1234_v25  ;;  %v703_v31 = vsub.f32 %v696_v37, %v599_v9 }
  0xcd   : > { %v605_v17 = vmul.f32 %v603_v7, %v392_v63  ;;  %v606_v60 = vmul.f32 %v604_v8, %v392_v63  ;;  %v681_v12 = vadd.f32 %v680_v39, %v679_v6  ;;  %v704_v32 = vsub.f32 %v700_v38, %v600_v10 }
  0xcf   : > { %v791_v15 = vmul.f32 %v789_v2, %v605_v17  ;;  %v792_v19 = vmul.f32 %v790_v5, %v606_v60  ;;  %682 = vadd.xlane.f32.xlu0 %v681_v12  ;;  %v770_v23 = vmul.f32 %v768_v14, %v605_v17  ;;  %v771_v24 = vmul.f32 %v769_v18, %v606_v60 }
  0xd0   : > { %v833_v33 = vmul.f32 %v831_v28, %v605_v17  ;;  %v834_v34 = vmul.f32 %v832_v29, %v606_v60  ;;  %v735_v35 = vmul.f32 %v728_v30, %v605_v17  ;;  %v736_v36 = vmul.f32 %v732_v20, %v606_v60 }
  0xd1   : > { %v849_v22 = vmul.f32 %v791_v15, %v791_v15  ;;  %v850_v42 = vmul.f32 %v792_v19, %v792_v19  ;;  %v705_v16 = vmul.f32 %v703_v31, %v605_v17  ;;  %v706_v1 = vmul.f32 %v704_v32, %v606_v60 }
  0xd2   : > { %v835_v50 = vmul.f32 %v770_v23, %v770_v23  ;;  %v836_v13 = vmul.f32 %v771_v24, %v771_v24  ;;  %v812_v41 = vmul.f32 %v810_v21, %v605_v17  ;;  %v813_v51 = vmul.f32 %v811_v40, %v606_v60 }
  0xd3   : > { %v737_v25 = vsel %vm595_vm1, %v735_v35, 0.0  ;;  %v738_v59 = vsel %vm595_vm1, %v736_v36, 0.0  ;;  %v707_v43 = vmul.f32 %v705_v16, %v705_v16  ;;  %v708_v44 = vmul.f32 %v706_v1, %v706_v1 }
  0xd4   : > { %v879_v37 = vmul.f32 %v833_v33, %v833_v33  ;;  %v880_v38 = vmul.f32 %v834_v34, %v834_v34  ;;  %v739_v48 = vadd.f32 %v738_v59, %v737_v25  ;;  %v851_v26 = vsel %vm595_vm1, %v849_v22, 0.0 }
  0xd5   : > { %v709_v49 = vsel %vm595_vm1, %v707_v43, 0.0  ;;  %v710_v47 = vsel %vm595_vm1, %v708_v44, 0.0  ;;  %v852_v53 = vsel %vm595_vm1, %v850_v42, 0.0  ;;  %v865_v57 = vmul.f32 %v812_v41, %v812_v41 }
  0xd6   : > { %740 = vadd.xlane.f32.xlu1 %v739_v48  ;;  %v711_v45 = vadd.f32 %v710_v47, %v709_v49  ;;  %v866_v46 = vmul.f32 %v813_v51, %v813_v51  ;;  %v837_v55 = vsel %vm595_vm1, %v835_v50, 0.0  ;;  %v838_v52 = vsel %vm595_vm1, %v836_v13, 0.0 }
  0xd7   : > { %v853_v27 = vadd.f32 %v852_v53, %v851_v26  ;;  %v881_v54 = vsel %vm595_vm1, %v879_v37, 0.0  ;;  %v882_v56 = vsel %vm595_vm1, %v880_v38, 0.0  ;;  %v839_v58 = vadd.f32 %v838_v52, %v837_v55 }
  0xd8   : > { %712 = vadd.xlane.f32.xlu0 %v711_v45  ;;  %v867_v61 = vsel %vm595_vm1, %v865_v57, 0.0  ;;  %v868_v62 = vsel %vm595_vm1, %v866_v46, 0.0  ;;  %v883_v63 = vadd.f32 %v882_v56, %v881_v54 }
  0xd9   : > { %v869_v2 = vadd.f32 %v868_v62, %v867_v61 }
  0xda   : > { %854 = vadd.xlane.f32.xlu1 %v853_v27 }
  0xdc   : > { %840 = vadd.xlane.f32.xlu0 %v839_v58 }
  0xde   : > { %884 = vadd.xlane.f32.xlu1 %v883_v63 }
  0xe0   : > { %870 = vadd.xlane.f32.xlu0 %v869_v2 }
  0xf6   : > { %v474_v3 = vpop.xlane.xlu1 %473 }
  0xf7   : > { %v475_v4 = vrot.slane %v474_v3, 4 }
  0xf9   : > { %v476_v5 = vadd.f32 %v475_v4, %v474_v3 }
  0xfb   : > { %v477_v6 = vrot.slane %v476_v5, 2 }
  0xfd   : > { %v478_v7 = vadd.f32 %v477_v6, %v476_v5 }
  0xff   : > { %v479_v8 = vrot.slane %v478_v7, 1 }
 0x101   : > { %v480_v39 = vadd.f32 %v479_v8, %v478_v7 }
 0x103   : > { %1023 = vpush %v480_v39 }
 0x134   : > { %s1024_s20 = spop %1023 }
 0x135   : > { %s722_s25 = smul.f32 %s1024_s20, %s287_s21  ;;  %s285_s20 = scalar_lea.vmem %s1408_s5, %s1178_s26 }
 0x15c   : > { %v683_v9 = vpop.xlane.xlu0 %682 }
 0x15d   : > { %v684_v17 = vrot.slane %v683_v9, 4 }
 0x15f   : > { %v685_v60 = vadd.f32 %v684_v17, %v683_v9 }
 0x161   : > { %v686_v11 = vrot.slane %v685_v60, 2 }
 0x163   : > { %v687_v12 = vadd.f32 %v686_v11, %v685_v60  ;;  %v741_v10 = vpop.xlane.xlu1 %740 }
 0x164   : > { %v742_v18 = vrot.slane %v741_v10, 4 }
 0x165   : > { %v688_v14 = vrot.slane %v687_v12, 1  ;;  %v713_v0 = vpop.xlane.xlu0 %712 }
 0x166   : > { %v743_v19 = vadd.f32 %v742_v18, %v741_v10  ;;  %v714_v30 = vrot.slane %v713_v0, 4 }
 0x167   : > { %v689_v15 = vadd.f32 %v688_v14, %v687_v12  ;;  %v855_v20 = vpop.xlane.xlu1 %854 }
 0x168   : > { %v744_v23 = vrot.slane %v743_v19, 2  ;;  %v715_v24 = vadd.f32 %v714_v30, %v713_v0  ;;  %v856_v28 = vrot.slane %v855_v20, 4 }
 0x169   : > { %1025 = vpush %v689_v15  ;;  %v841_v29 = vpop.xlane.xlu0 %840 }
 0x16a   : > { %v716_v21 = vrot.slane %v715_v24, 2  ;;  %v857_v40 = vadd.f32 %v856_v28, %v855_v20  ;;  %v842_v31 = vrot.slane %v841_v29, 4  ;;  %v745_v32 = vadd.f32 %v744_v23, %v743_v19 }
 0x16b   : > { %v885_v22 = vpop.xlane.xlu1 %884 }
 0x16c   : > { %v858_v42 = vrot.slane %v857_v40, 2  ;;  %v843_v33 = vadd.f32 %v842_v31, %v841_v29  ;;  %v886_v34 = vrot.slane %v885_v22, 4  ;;  %v717_v35 = vadd.f32 %v716_v21, %v715_v24 }
 0x16d   : > { %v871_v36 = vpop.xlane.xlu0 %870  ;;  %v746_v16 = vrot.slane %v745_v32, 1 }
 0x16e   : > { %v844_v1 = vrot.slane %v843_v33, 2  ;;  %v887_v50 = vadd.f32 %v886_v34, %v885_v22  ;;  %v872_v13 = vrot.slane %v871_v36, 4  ;;  %v718_v41 = vrot.slane %v717_v35, 1 }
 0x16f   : > { %v859_v51 = vadd.f32 %v858_v42, %v857_v40  ;;  %v747_v37 = vadd.f32 %v746_v16, %v745_v32 }
 0x170   : > { %v888_v25 = vrot.slane %v887_v50, 2  ;;  %v873_v59 = vadd.f32 %v872_v13, %v871_v36  ;;  %v719_v43 = vadd.f32 %v718_v41, %v717_v35  ;;  %v845_v44 = vadd.f32 %v844_v1, %v843_v33 }
 0x171   : > { %v860_v38 = vrot.slane %v859_v51, 1 }
 0x172   : > { %v889_v48 = vadd.f32 %v888_v25, %v887_v50  ;;  %v874_v49 = vrot.slane %v873_v59, 2  ;;  %1027 = vpush %v719_v43  ;;  %v846_v47 = vrot.slane %v845_v44, 1 }
 0x173   : > { %1029 = vpush %v747_v37  ;;  %v861_v45 = vadd.f32 %v860_v38, %v859_v51 }
 0x174   : > { %v875_v26 = vadd.f32 %v874_v49, %v873_v59  ;;  %v847_v53 = vadd.f32 %v846_v47, %v845_v44  ;;  %v890_v57 = vrot.slane %v889_v48, 1 }
 0x176   : > { %1031 = vpush %v847_v53  ;;  %v876_v46 = vrot.slane %v875_v26, 1  ;;  %v891_v52 = vadd.f32 %v890_v57, %v889_v48 }
 0x177   : > { %1033 = vpush %v861_v45 }
 0x178   : > { %v877_v55 = vadd.f32 %v876_v46, %v875_v26 }
 0x17a   : > { %1035 = vpush %v877_v55 }
 0x17b   : > { %1037 = vpush %v891_v52 }
 0x19a   : > { %s1026_s22 = spop %1025 }
 0x1a3   : > { %s1028_s23 = spop %1027 }
 0x1a4   : > { %s1030_s24 = spop %1029  ;;  %s721_s6 = smul.f32 0.5, %s1028_s23 }
 0x1a5   : > { %s749_s29 = ssub.f32 %s722_s25, %s1030_s24 }
 0x1a6   : > { %s897_s12 = sadd.f32 %s1026_s22, %s721_s6 }
 0x1a7   : > { %s1032_s27 = spop %1031  ;;  %s750_s9 = smul.f32 0.25, %s749_s29 }
 0x1a8   : > { %s1034_s28 = spop %1033 }
 0x1a9   : > { %s863_s30 = sadd.f32 %s1034_s28, %s1032_s27 }
 0x1aa   : > { %s898_s16 = sadd.f32 %s897_s12, %s750_s9 }
 0x1ab   : > { %s1036_s7 = spop %1035  ;;  %s864_s11 = smul.f32 0.0078125, %s863_s30 }
 0x1ac   : > { %s1038_s8 = spop %1037 }
 0x1ad   : > { %s893_s10 = sadd.f32 %s1038_s8, %s1036_s7 }
 0x1af   : > { %s894_s13 = smul.f32 0.015625, %s893_s10 }
 0x1b1   : > { %s895_s15 = sadd.f32 %s894_s13, %s864_s11 }
 0x1b3   : > { %s896_s14 = smul.f32 5.0, %s895_s15 }
 0x1b5   : > { %s899_s21 = sadd.f32 %s898_s16, %s896_s14 }
 0x1b7   : > { %v900_v27 = vstv %s899_s21 }
 0x1b8   : > { %903 = vst.msk [vmem:[%s285_s20] sm:$0x1] %vm902_vm15, %v900_v27 }
 0x1b9 PF: > { %s16_s18 = sadd.s32 1, %s1113_s18  }
 0x1ba   : > { %p13_p1 = scmp.ge.s32.totalorder %s16_s18, 4  }
 0x1bc   :  { %15 = sbr.rel (!%p13_p1) target bundleno = 1 (0x1), region = 88 }
 0x1c3   :  { %921 = vsyncpa [#allocation3], 1 }
 0x1c4   :  { %923 = vsyncpa [#allocation3 + $0x1], 1 }

</bundles_post_ra>
